<compile_context>
chip_gen: v7x
topology: tpu7x:2x2x1
jax: 0.10.0
libtpu: 0.0.40
codegen_flags: <defaults>
</compile_context>

<pallas_src>
import functools

import jax
import jax.numpy as jnp
from jax.experimental import pallas as pl
from jax.experimental.pallas import tpu as pltpu


def _combine_cat_kernel(c2, x_ref, w_ref, b_ref, y_ref, o_ref):
    # x_ref: (C1, TL)  w_ref: (C2, C1)  b_ref: (C2, 1)  y_ref: (Cy, TL)
    # o_ref: (C2 + Cy, TL)
    h = jnp.dot(w_ref[...], x_ref[...], preferred_element_type=jnp.float32)
    h = h + b_ref[...].astype(jnp.float32)
    # Two direct sub-slice stores — no in-kernel concatenate, no lane shuffles.
    # If C2 is not a multiple of the sublane pack the second store is masked;
    # that is cheap here and production channel counts (multiples of 8/16)
    # avoid it entirely.
    o_ref[:c2, :] = h.astype(o_ref.dtype)            # conv result -> rows [0, C2)
    o_ref[c2:, :] = y_ref[...].astype(o_ref.dtype)   # skip feats  -> rows [C2, C2+Cy)


def _combine_sum_kernel(x_ref, w_ref, b_ref, y_ref, o_ref):
    # x_ref: (C1, TL)  w_ref: (C2, C1)  b_ref: (C2, 1)  y_ref: (C2, TL)
    # o_ref: (C2, TL)
    h = jnp.dot(w_ref[...], x_ref[...], preferred_element_type=jnp.float32)
    h = h + b_ref[...].astype(jnp.float32)
    o_ref[...] = (h + y_ref[...].astype(jnp.float32)).astype(o_ref.dtype)


def _round_up(v, m):
    return -(-v // m) * m


def _vmem_budget_and_limit():
    """Generation-aware (tile budget, scoped VMEM limit) in bytes."""
    try:
        cap = pltpu.get_tpu_info().vmem_capacity_bytes
    except Exception:  # interpret mode / query unavailable -> conservative (v7x)
        cap = 64 * 1024 * 1024
    limit = min(96 * 1024 * 1024, int(cap * 3 // 4))   # 96 MiB on 128 MiB parts, 48 MiB on v7x
    budget = limit // 2                                # headroom for double-buffering slack
    return budget, limit


def _choose_tile_hw(hw, per_lane_bytes, fixed_bytes, budget_bytes, itemsize):
    """Spatial (lane) tile width: largest legal tile under the VMEM budget.

    Returns either `hw` (single full-extent block) or a multiple of 128.  When
    the chosen tile does not divide `hw`, the caller uses a cdiv grid and
    Pallas masks the final partial block.
    """
    avail = max(budget_bytes - fixed_bytes, 128)
    # Whole spatial extent as one block if it fits (also covers hw < 128).
    if hw * per_lane_bytes <= avail:
        return hw
    # Largest 128-multiple that fits the budget.
    max_tile = max(128, (avail // per_lane_bytes) // 128 * 128)
    # DMA-burst floor: >= ~2 KiB contiguous bytes per channel row.
    min_tile = max(128, _round_up(-(-2048 // (128 * itemsize)), 1) * 128)
    max_tile = max(max_tile, min_tile)
    max_tile = min(max_tile, _round_up(hw, 128))
    # Prefer a divisor of hw (no masked tail); bounded trace-time search.
    cand, steps = max_tile, 0
    while cand >= min_tile and steps < 512:
        if hw % cand == 0:
            return cand
        cand -= 128
        steps += 1
    return max_tile


@functools.partial(jax.jit, static_argnames=("method",))
def combine(x, y, w, b, *, method="cat"):
    """Pallas implementation of Combine.forward (NCHW in, NCHW out).

    Args:
      x: (N, C1, H, W)  NCHW, like the PyTorch module.
      y: (N, Cy, H, W)  NCHW. For method='sum', Cy must equal C2.
      w: (C2, C1)       conv1x1 weight, i.e. the PyTorch (dim2, dim1, 1, 1)
                        weight with the trailing 1x1 dims dropped.
      b: (C2,)          conv1x1 bias.
    Returns:
      (N, C2 + Cy, H, W) for 'cat', (N, C2, H, W) for 'sum'  (NCHW, x.dtype).
    """
    N, C1, H, W = x.shape
    Cy = y.shape[1]
    C2 = w.shape[0]
    if w.shape != (C2, C1):
        raise ValueError(f"weight must be (dim2, dim1) = ({C2}, {C1}), got {w.shape}")
    HW = H * W

    if method == "cat":
        kernel = functools.partial(_combine_cat_kernel, C2)
        c_out = C2 + Cy
    elif method == "sum":
        if Cy != C2:
            raise ValueError("'sum' requires y channels == dim2")
        kernel = _combine_sum_kernel
        c_out = C2
    else:
        raise ValueError(f"Method {method} not recognized.")

    out_dtype = x.dtype
    itemsize = jnp.dtype(out_dtype).itemsize

    # Contiguous reshapes only (fold H,W into one lane axis) — no HBM layout passes.
    x3 = x.reshape(N, C1, HW)
    y3 = y.reshape(N, Cy, HW).astype(out_dtype)
    # Weight/bias in the activation dtype: avoids upcasting the x tile before
    # the MXU; accumulation stays f32 via preferred_element_type.
    w2 = w.astype(out_dtype)
    b2 = b.reshape(C2, 1).astype(out_dtype)

    # --- VMEM footprint accounting (sublane-padded) --------------------------
    pack = max(8, 32 // itemsize)                    # 8 f32 / 16 bf16 / 32 int8
    io_rows = _round_up(C1, pack) + _round_up(Cy, pack) + _round_up(c_out, pack)
    per_lane = 2 * io_rows * itemsize + _round_up(C2, 8) * 4   # 2x dbl-buffered I/O + f32 h
    fixed = 2 * _round_up(C2, pack) * (_round_up(C1, 128) + 128) * itemsize  # w + b blocks

    vmem_budget, vmem_limit = _vmem_budget_and_limit()
    tile_hw = _choose_tile_hw(HW, per_lane, fixed, vmem_budget, itemsize)
    n_sp = pl.cdiv(HW, tile_hw)

    # --- grid: larger axis first so v7x's two TCs / megacore split evenly ----
    if n_sp >= N:
        grid = (n_sp, N)
        xyo_map = lambda s, n: (n, 0, s)
        wb_map = lambda s, n: (0, 0)
    else:
        grid = (N, n_sp)
        xyo_map = lambda n, s: (n, 0, s)
        wb_map = lambda n, s: (0, 0)

    cost = pl.CostEstimate(
        flops=2 * N * HW * C1 * C2 + 2 * N * HW * C2,
        transcendentals=0,
        bytes_accessed=(x3.size + y3.size + N * c_out * HW) * itemsize
        + (w2.size + b2.size) * itemsize,
    )

    out3 = pl.pallas_call(
        kernel,
        out_shape=jax.ShapeDtypeStruct((N, c_out, HW), out_dtype),
        grid_spec=pltpu.PrefetchScalarGridSpec(
            num_scalar_prefetch=0,
            grid=grid,
            in_specs=[
                pl.BlockSpec((None, C1, tile_hw), xyo_map),   # x tile
                pl.BlockSpec((C2, C1), wb_map),               # weight (resident)
                pl.BlockSpec((C2, 1), wb_map),                # bias   (resident)
                pl.BlockSpec((None, Cy, tile_hw), xyo_map),   # y tile
            ],
            out_specs=pl.BlockSpec((None, c_out, tile_hw), xyo_map),
        ),
        compiler_params=pltpu.CompilerParams(
            dimension_semantics=("parallel", "parallel"),
            vmem_limit_bytes=vmem_limit,
        ),
        cost_estimate=cost,
    )(x3, w2, b2, y3)

    return out3.reshape(N, c_out, H, W)


def _reference(x, y, w, b, method="cat"):
    # Pure-JAX reference for the PyTorch semantics (w is (C2, C1)).
    h = jnp.einsum("oc,nchw->nohw", w, x) + b[None, :, None, None]
    if method == "cat":
        return jnp.concatenate([h, y], axis=1)
    return h + y


if __name__ == "__main__":
    key = jax.random.PRNGKey(0)
    k_x, k_y, k_y2, k_w, k_b = jax.random.split(key, 5)

    N, dim1, dim2, H, W = 2, 4, 8, 16, 16

    x = jax.random.normal(k_x, (N, dim1, H, W), dtype=jnp.float32)
    y_cat = jax.random.normal(k_y, (N, dim2, H, W), dtype=jnp.float32)   # skip feats
    y_sum = jax.random.normal(k_y2, (N, dim2, H, W), dtype=jnp.float32)

    # conv1x1 parameters; PyTorch weight is (dim2, dim1, 1, 1) -> stored as (dim2, dim1).
    w = jax.random.normal(k_w, (dim2, dim1), dtype=jnp.float32) * 0.1
    b = jax.random.normal(k_b, (dim2,), dtype=jnp.float32) * 0.1

    out_cat = jax.block_until_ready(combine(x, y_cat, w, b, method="cat"))
    out_sum = jax.block_until_ready(combine(x, y_sum, w, b, method="sum"))

    assert out_cat.shape == (N, dim2 + dim2, H, W), out_cat.shape
    assert out_sum.shape == (N, dim2, H, W), out_sum.shape

    ref_cat = _reference(x, y_cat, w, b, method="cat")
    ref_sum = _reference(x, y_sum, w, b, method="sum")
    assert jnp.allclose(out_cat, ref_cat, atol=1e-5, rtol=1e-5)
    assert jnp.allclose(out_sum, ref_sum, atol=1e-5, rtol=1e-5)

    print("KERNEL_OK")
</pallas_src>

<mosaic_0001>
module attributes {stable_mosaic.version = 11 : i64} {
  func.func @_combine_cat_kernel(%arg0: i32, %arg1: i32, %arg2: memref<1x4x256xf32, #tpu.memory_space<vmem>>, %arg3: memref<8x4xf32, #tpu.memory_space<vmem>>, %arg4: memref<8x1xf32, #tpu.memory_space<vmem>>, %arg5: memref<1x8x256xf32, #tpu.memory_space<vmem>>, %arg6: memref<1x16x256xf32, #tpu.memory_space<vmem>>) attributes {dimension_semantics = [#tpu.dimension_semantics<parallel>, #tpu.dimension_semantics<parallel>], iteration_bounds = array<i64: 2, 1>, scalar_prefetch = 0 : i64, scratch_operands = 0 : i64, tpu.core_type = #tpu.core_type<tc>, window_params = [{transform_indices = @transform_0, window_bounds = array<i64: 1, 4, 256>}, {pipeline_mode = #tpu.pipeline_mode<synchronous>, transform_indices = @transform_1, window_bounds = array<i64: 8, 4>}, {pipeline_mode = #tpu.pipeline_mode<synchronous>, transform_indices = @transform_2, window_bounds = array<i64: 8, 1>}, {transform_indices = @transform_3, window_bounds = array<i64: 1, 8, 256>}, {transform_indices = @transform_4, window_bounds = array<i64: 1, 16, 256>}]} {
    %c0 = arith.constant 0 : index
    %c0_0 = arith.constant 0 : index
    %0 = vector.load %arg3[%c0, %c0_0] : memref<8x4xf32, #tpu.memory_space<vmem>>, vector<8x4xf32>
    %c0_1 = arith.constant 0 : index
    %c0_2 = arith.constant 0 : index
    %c0_3 = arith.constant 0 : index
    %1 = vector.load %arg2[%c0_1, %c0_2, %c0_3] : memref<1x4x256xf32, #tpu.memory_space<vmem>>, vector<1x4x256xf32>
    %2 = vector.shape_cast %1 : vector<1x4x256xf32> to vector<4x256xf32>
    %cst = arith.constant dense<0.000000e+00> : vector<8x256xf32>
    %3 = tpu.matmul %0, %2, %cst {dimension_numbers = #tpu.dot_dimension_numbers<[1], [0], [0], [1], [0, 0, 1, 1], [], []>} : vector<8x4xf32>, vector<4x256xf32>, vector<8x256xf32> -> vector<8x256xf32>
    %c0_4 = arith.constant 0 : index
    %c0_5 = arith.constant 0 : index
    %4 = vector.load %arg4[%c0_4, %c0_5] : memref<8x1xf32, #tpu.memory_space<vmem>>, vector<8x1xf32>
    %5 = vector.broadcast %4 : vector<8x1xf32> to vector<8x256xf32>
    %6 = arith.addf %3, %5 : vector<8x256xf32>
    %c0_6 = arith.constant 0 : index
    %c0_7 = arith.constant 0 : index
    %c0_8 = arith.constant 0 : index
    %7 = vector.load %arg6[%c0_6, %c0_7, %c0_8] : memref<1x16x256xf32, #tpu.memory_space<vmem>>, vector<1x8x256xf32>
    %8 = vector.shape_cast %7 : vector<1x8x256xf32> to vector<8x256xf32>
    %9 = vector.shape_cast %6 : vector<8x256xf32> to vector<1x8x256xf32>
    tpu.vector_store %arg6[%c0_6, %c0_7, %c0_8], %9 {strides = array<i32>} : memref<1x16x256xf32, #tpu.memory_space<vmem>>, vector<1x8x256xf32>,
    %c0_9 = arith.constant 0 : index
    %c0_10 = arith.constant 0 : index
    %c0_11 = arith.constant 0 : index
    %10 = vector.load %arg5[%c0_9, %c0_10, %c0_11] : memref<1x8x256xf32, #tpu.memory_space<vmem>>, vector<1x8x256xf32>
    %11 = vector.shape_cast %10 : vector<1x8x256xf32> to vector<8x256xf32>
    %c0_12 = arith.constant 0 : index
    %c8 = arith.constant 8 : index
    %c0_13 = arith.constant 0 : index
    %12 = vector.load %arg6[%c0_12, %c8, %c0_13] : memref<1x16x256xf32, #tpu.memory_space<vmem>>, vector<1x8x256xf32>
    %13 = vector.shape_cast %12 : vector<1x8x256xf32> to vector<8x256xf32>
    %14 = vector.shape_cast %11 : vector<8x256xf32> to vector<1x8x256xf32>
    tpu.vector_store %arg6[%c0_12, %c8, %c0_13], %14 {strides = array<i32>} : memref<1x16x256xf32, #tpu.memory_space<vmem>>, vector<1x8x256xf32>,
    return
  }
  func.func @transform_0(%arg0: i32, %arg1: i32) -> (i32, i32, i32) {
    %c0_i32 = arith.constant 0 : i32
    %c0_i32_0 = arith.constant 0 : i32
    return %arg0, %c0_i32, %arg1 : i32, i32, i32
  }
  func.func @transform_1(%arg0: i32, %arg1: i32) -> (i32, i32) {
    %c0_i32 = arith.constant 0 : i32
    %c0_i32_0 = arith.constant 0 : i32
    %c0_i32_1 = arith.constant 0 : i32
    return %c0_i32, %c0_i32_0 : i32, i32
  }
  func.func @transform_2(%arg0: i32, %arg1: i32) -> (i32, i32) {
    %c0_i32 = arith.constant 0 : i32
    %c0_i32_0 = arith.constant 0 : i32
    %c0_i32_1 = arith.constant 0 : i32
    return %c0_i32, %c0_i32_0 : i32, i32
  }
  func.func @transform_3(%arg0: i32, %arg1: i32) -> (i32, i32, i32) {
    %c0_i32 = arith.constant 0 : i32
    %c0_i32_0 = arith.constant 0 : i32
    return %arg0, %c0_i32, %arg1 : i32, i32, i32
  }
  func.func @transform_4(%arg0: i32, %arg1: i32) -> (i32, i32, i32) {
    %c0_i32 = arith.constant 0 : i32
    %c0_i32_0 = arith.constant 0 : i32
    return %arg0, %c0_i32, %arg1 : i32, i32, i32
  }
}

</mosaic_0001>

<bundles_post_ra>
// kernel: combine.1
= control target key start
LH: loop header
LB: loop body
LE: loop exit
PB: predicated region body
PF: predicated region fallthrough
CT: control target
= control target key end

     0   :  { %s572_s15 = smov 0   ;;  %s574_s16 = smov 0   ;;  %s614_s0 = inlined_call_operand.vmem [shape: f32[2,4,256], index: 0, kind: input, shape index: {}]   ;;  %s615_s1 = inlined_call_operand.vmem [shape: f32[8,4], index: 1, kind: input, shape index: {}]   ;;  %s616_s2 = inlined_call_operand.vmem [shape: f32[8,1], index: 2, kind: input, shape index: {}]   ;;  %s617_s3 = inlined_call_operand.vmem [shape: f32[2,8,256], index: 3, kind: input, shape index: {}]   ;;  %s618_s4 = inlined_call_operand.vmem [shape: f32[2,16,256], index: 4, kind: output, shape index: {}]  }
   0x1   :  { %s576_s17 = smov 0  }
   0x2 LB: > { %s26_s18 = sadd.s32 1, %s539_s16  ;;  %p478_p0 = scmp.ge.s32.totalorder %s543_s17, 1  ;;  %s543_s17 = sphi %s576_s17, %s14_s17   ;;  %s539_s16 = sphi %s574_s16, %s620_s16   ;;  %s535_s15 = sphi %s572_s15, %s619_s15  }
   0x3   : > { %p28_p1 = scmp.ge.s32.totalorder %s26_s18, 2  ;;  %p200_p2 = scmp.lt.s32.totalorder %s543_s17, 3 }
   0x5   : > { %s622_s18 = smov (%p28_p1, %s26_s18), 0  ;;  %p201_p3 = pnand %p478_p0, %p200_p2 }
   0x6   : > { %p244_p4 = scmp.lt.s32.totalorder (!%p201_p3), %s535_s15, 1  ;;  %v545_v0 = vmov (!%p201_p3), 0.0   ;;  %v546_v1 = vmov (!%p201_p3), 0   ;;  %v275_v2 = vld [vmem:[%s616_s2] sm:$0xff] (!%p201_p3)  ;;  %vm287_vm0 = vcmask (!%p201_p3), 1043456   ;;  %vm283_vm1 = vcmask (!%p201_p3), 31744  }
   0x7   : > { %204 = sbr.rel (%p201_p3) target bundleno = 238 (0xee), region = 36  ;;  %356 = vmatprep.mubr.f32.mxu0 (!%p201_p3), %v545_v0  ;;  %519 = vset.pattern.permute.xlu0 (!%p201_p3), %v546_v1  ;;  %v273_v5 = vld [vmem:[%s615_s1] sm:$0xff] (!%p201_p3) }
   0x8   : > { %278 = vperm.xlu0 (!%p201_p3), %519, %v275_v2  }
   0xe   : > { %s624_s15 = smov (!%p244_p4, %s535_s15), 1 }
   0xf   : > { %s490_s21 = sshll.u32 %s624_s15, 3  ;;  %s491_s27 = sshll.u32 %s624_s15, 4 }
  0x10   : > { %s251_s24 = scalar_lea.vmem %s614_s0, %s490_s21  ;;  %s492_s28 = sshll.u32 %s624_s15, 5 }
  0x11   : > { %v274_v3 = vld [vmem:[%s251_s24] sm:$0xff]  ;;  %s261_s5 = scalar_lea.vmem %s617_s3, %s491_s27  ;;  %s271_s8 = scalar_lea.vmem %s618_s4, %s492_s28 }
  0x12   : > { %v282_v4 = vcombine.high %v274_v3, %v274_v3  ;;  %v365_v6 = vld [vmem:[%s261_s5] sm:$0xff]  ;;  %v366_v7 = vld [vmem:[%s261_s5 + $0x8] sm:$0xff] }
  0x13   : > { %367 = vst [vmem:[%s271_s8 + $0x10] sm:$0xff] %v365_v6  ;;  %368 = vst [vmem:[%s271_s8 + $0x18] sm:$0xff] %v366_v7 }
  0x14   : > { %485 = vmatprep.subr.msk.mxu0 %vm287_vm0, %v282_v4 }
  0x15   : > { %486 = vmatpush1.msk.msra.mxu0 %vm287_vm0, %v274_v3 }
  0x16   : > { %487 = vmatmul.mubr.msk.f32.vlgmr.msra.gmra.mrb[0].mxu0 %vm283_vm1, %v273_v5 }
  0x87   : > { %v279_v8 = vpop.permute.xlu0 %278 }
  0xe9   : > { %v358_v9 = vpop.f32.mrb[0].mxu0 }
  0xea   : > { %v359_v10 = vadd.f32 %v358_v9, %v279_v8  ;;  %v360_v11 = vpop.f32.mrb[1].mxu0 }
  0xeb   : > { %v361_v12 = vadd.f32 %v360_v11, %v279_v8 }
  0xec   : > { %363 = vst [vmem:[%s271_s8] sm:$0xff] %v359_v10 }
  0xed   : > { %364 = vst [vmem:[%s271_s8 + $0x8] sm:$0xff] %v361_v12 }
  0xee PF: > { %s14_s17 = sadd.s32 1, %s543_s17   ;;  %s619_s15 = smov %s539_s16 }
  0xef   : > { %p11_p5 = scmp.ge.s32.totalorder %s14_s17, 4   ;;  %s620_s16 = smov %s622_s18 }
  0xf1   :  { %13 = sbr.rel (!%p11_p5) target bundleno = 2 (0x2), region = 69 }

</bundles_post_ra>
